<compile_context>
chip_gen: v5e
topology: v5e:2x2
jax: 0.10.0
libtpu: 0.0.40
codegen_flags: <defaults>
</compile_context>

<pallas_src>
import math
from functools import partial
from itertools import product

import jax
import jax.numpy as jnp
from jax import lax
from jax.experimental import pallas as pl
from jax.experimental.pallas import tpu as pltpu


def _round_up(x, m):
    return (x + m - 1) // m * m


# --------------------------------------------------------------------------- #
# Pallas kernel: tiled matmul + bias (the full conv contraction runs here).
# --------------------------------------------------------------------------- #
def _matmul_bias_kernel(a_ref, b_ref, bias_ref, o_ref, acc_ref):
    k = pl.program_id(2)

    @pl.when(k == 0)
    def _():
        acc_ref[...] = jnp.zeros_like(acc_ref)

    acc_ref[...] += jnp.dot(a_ref[...], b_ref[...],
                            preferred_element_type=jnp.float32)

    @pl.when(k == pl.num_programs(2) - 1)
    def _():
        o_ref[...] = (acc_ref[...] + bias_ref[...]).astype(o_ref.dtype)


# --------------------------------------------------------------------------- #
# Weight transform: pad + average of the 8 corner-shifted views (tiny, wrapper).
# --------------------------------------------------------------------------- #
def _fused_weight(weight, multiplier):
    w = weight * multiplier
    wp = jnp.pad(w, ((0, 0), (0, 0), (1, 1), (1, 1), (1, 1)))
    w_eff = (
        wp[:, :, 1:, 1:, 1:] + wp[:, :, :-1, 1:, 1:]
        + wp[:, :, 1:, :-1, 1:] + wp[:, :, :-1, :-1, 1:]
        + wp[:, :, 1:, 1:, :-1] + wp[:, :, :-1, 1:, :-1]
        + wp[:, :, 1:, :-1, :-1] + wp[:, :, :-1, :-1, :-1]
    ) / 8.0
    return w_eff  # (O, I, K+1, K+1, K+1)


# --------------------------------------------------------------------------- #
# Forward wrapper.
# --------------------------------------------------------------------------- #
@partial(jax.jit, static_argnames=("padding",))
def fused_downsample(x, weight, bias, padding=0):
    """x: (N, C_in, D, H, W); weight: (C_out, C_in, K, K, K); bias: (C_out,)."""
    n, c_in, d, h, w_sp = x.shape
    c_out, c_in_w, ks = weight.shape[0], weight.shape[1], weight.shape[2]
    assert c_in == c_in_w
    fan_in = c_in * ks ** 3
    multiplier = math.sqrt(2.0 / fan_in)

    w_eff = _fused_weight(weight.astype(jnp.float32), multiplier)
    ke = ks + 1                      # effective (fused) kernel size
    p = padding
    d_out = (d + 2 * p - ke) // 2 + 1
    h_out = (h + 2 * p - ke) // 2 + 1
    w_out = (w_sp + 2 * p - ke) // 2 + 1

    # Spatial padding + channels-last relayout.
    xp = jnp.pad(x.astype(jnp.float32),
                 ((0, 0), (0, 0), (p, p), (p, p), (p, p)))
    xc = jnp.transpose(xp, (0, 2, 3, 4, 1))          # (N, Dp, Hp, Wp, C_in)

    # im2col: stride-2 patch gather, tap-major / channel-minor contraction order.
    patches = []
    for kd, kh, kw in product(range(ke), repeat=3):
        patches.append(
            xc[:, kd:kd + 2 * d_out - 1:2,
                  kh:kh + 2 * h_out - 1:2,
                  kw:kw + 2 * w_out - 1:2, :]
        )
    cols = jnp.stack(patches, axis=4)                # (N, Do, Ho, Wo, ke^3, C_in)
    m = n * d_out * h_out * w_out
    k_dim = ke ** 3 * c_in
    cols = cols.reshape(m, k_dim)

    # Weight matrix with matching (kd, kh, kw, ci) contraction ordering.
    wmat = jnp.transpose(w_eff, (2, 3, 4, 1, 0)).reshape(k_dim, c_out)

    # Pad everything to MXU/lane-friendly tiles (zero padding keeps results exact).
    tm, tn = 128, 128
    m_pad = _round_up(m, tm)
    n_pad = _round_up(c_out, tn)
    k_pad = _round_up(k_dim, 128)
    tk = 256 if k_pad % 256 == 0 else 128

    cols_p = jnp.pad(cols, ((0, m_pad - m), (0, k_pad - k_dim)))
    wmat_p = jnp.pad(wmat, ((0, k_pad - k_dim), (0, n_pad - c_out)))
    bias_p = jnp.pad(bias.astype(jnp.float32).reshape(1, c_out),
                     ((0, 0), (0, n_pad - c_out)))

    grid = (m_pad // tm, n_pad // tn, k_pad // tk)
    out_flat = pl.pallas_call(
        _matmul_bias_kernel,
        out_shape=jax.ShapeDtypeStruct((m_pad, n_pad), jnp.float32),
        grid_spec=pltpu.PrefetchScalarGridSpec(
            num_scalar_prefetch=0,
            grid=grid,
            in_specs=[
                pl.BlockSpec((tm, tk), lambda i, j, k: (i, k)),
                pl.BlockSpec((tk, tn), lambda i, j, k: (k, j)),
                pl.BlockSpec((1, tn), lambda i, j, k: (0, j)),
            ],
            out_specs=pl.BlockSpec((tm, tn), lambda i, j, k: (i, j)),
            scratch_shapes=[pltpu.VMEM((tm, tn), jnp.float32)],
        ),
        compiler_params=pltpu.CompilerParams(
            dimension_semantics=("parallel", "parallel", "arbitrary")),
    )(cols_p, wmat_p, bias_p)

    out = out_flat[:m, :c_out].reshape(n, d_out, h_out, w_out, c_out)
    return jnp.transpose(out, (0, 4, 1, 2, 3))       # NCDHW


# --------------------------------------------------------------------------- #
# Pure-JAX reference mirroring the PyTorch forward exactly.
# --------------------------------------------------------------------------- #
def reference_forward(x, weight, bias, padding=0):
    c_out, c_in, ks = weight.shape[0], weight.shape[1], weight.shape[2]
    fan_in = c_in * ks ** 3
    w_eff = _fused_weight(weight.astype(jnp.float32), math.sqrt(2.0 / fan_in))
    out = lax.conv_general_dilated(
        x.astype(jnp.float32), w_eff,
        window_strides=(2, 2, 2),
        padding=[(padding, padding)] * 3,
        dimension_numbers=("NCDHW", "OIDHW", "NCDHW"))
    return out + bias.reshape(1, c_out, 1, 1, 1)


if __name__ == "__main__":
    key = jax.random.PRNGKey(0)
    k_w, k_b, k_x = jax.random.split(key, 3)

    # FusedDownsample(in_channel=4, out_channel=8, kernel_size=3, padding=1)
    n, c_in, c_out, ks, pad = 2, 4, 8, 3, 1
    spatial = 16

    weight = jax.random.normal(k_w, (c_out, c_in, ks, ks, ks), jnp.float32)
    bias = 0.1 * jax.random.normal(k_b, (c_out,), jnp.float32)
    x = jax.random.normal(k_x, (n, c_in, spatial, spatial, spatial), jnp.float32)

    out = fused_downsample(x, weight, bias, padding=pad)
    out = jax.block_until_ready(out)

    ref = reference_forward(x, weight, bias, padding=pad)
    assert out.shape == ref.shape == (n, c_out, 8, 8, 8), (out.shape, ref.shape)
    assert jnp.allclose(out, ref, atol=1e-3, rtol=1e-3), (
        float(jnp.max(jnp.abs(out - ref))))
    print("KERNEL_OK")
</pallas_src>

<mosaic_0001>
module attributes {stable_mosaic.version = 11 : i64} {
  func.func @_matmul_bias_kernel(%arg0: i32, %arg1: i32, %arg2: i32, %arg3: memref<128x256xf32, #tpu.memory_space<vmem>>, %arg4: memref<256x128xf32, #tpu.memory_space<vmem>>, %arg5: memref<1x128xf32, #tpu.memory_space<vmem>>, %arg6: memref<128x128xf32, #tpu.memory_space<vmem>>, %arg7: memref<128x128xf32, #tpu.memory_space<vmem>>) attributes {dimension_semantics = [#tpu.dimension_semantics<parallel>, #tpu.dimension_semantics<parallel>, #tpu.dimension_semantics<arbitrary>], iteration_bounds = array<i64: 8, 1, 1>, scalar_prefetch = 0 : i64, scratch_operands = 1 : i64, tpu.core_type = #tpu.core_type<tc>, window_params = [{transform_indices = @transform_0, window_bounds = array<i64: 128, 256>}, {transform_indices = @transform_1, window_bounds = array<i64: 256, 128>}, {transform_indices = @transform_2, window_bounds = array<i64: 1, 128>}, {transform_indices = @transform_3, window_bounds = array<i64: 128, 128>}]} {
    %c0_i32 = arith.constant 0 : i32
    %0 = arith.cmpi eq, %arg2, %c0_i32 : i32
    %1 = arith.extui %0 : i1 to i32
    %c0_i32_0 = arith.constant 0 : i32
    %2 = arith.cmpi ne, %1, %c0_i32_0 : i32
    scf.if %2 {
      %cst_10 = arith.constant 0.000000e+00 : f32
      %12 = vector.broadcast %cst_10 : f32 to vector<128x128xf32>
      %c0_11 = arith.constant 0 : index
      %c0_12 = arith.constant 0 : index
      %13 = vector.load %arg7[%c0_11, %c0_12] : memref<128x128xf32, #tpu.memory_space<vmem>>, vector<128x128xf32>
      tpu.vector_store %arg7[%c0_11, %c0_12], %12 {strides = array<i32>} : memref<128x128xf32, #tpu.memory_space<vmem>>, vector<128x128xf32>,
    } else {
    }
    %c0 = arith.constant 0 : index
    %c0_1 = arith.constant 0 : index
    %3 = vector.load %arg7[%c0, %c0_1] : memref<128x128xf32, #tpu.memory_space<vmem>>, vector<128x128xf32>
    %c0_2 = arith.constant 0 : index
    %c0_3 = arith.constant 0 : index
    %4 = vector.load %arg3[%c0_2, %c0_3] : memref<128x256xf32, #tpu.memory_space<vmem>>, vector<128x256xf32>
    %c0_4 = arith.constant 0 : index
    %c0_5 = arith.constant 0 : index
    %5 = vector.load %arg4[%c0_4, %c0_5] : memref<256x128xf32, #tpu.memory_space<vmem>>, vector<256x128xf32>
    %cst = arith.constant dense<0.000000e+00> : vector<128x128xf32>
    %6 = tpu.matmul %4, %5, %cst {dimension_numbers = #tpu.dot_dimension_numbers<[1], [0], [0], [1], [0, 0, 1, 1], [], []>} : vector<128x256xf32>, vector<256x128xf32>, vector<128x128xf32> -> vector<128x128xf32>
    %7 = arith.addf %3, %6 : vector<128x128xf32>
    %c0_6 = arith.constant 0 : index
    %c0_7 = arith.constant 0 : index
    %8 = vector.load %arg7[%c0_6, %c0_7] : memref<128x128xf32, #tpu.memory_space<vmem>>, vector<128x128xf32>
    tpu.vector_store %arg7[%c0_6, %c0_7], %7 {strides = array<i32>} : memref<128x128xf32, #tpu.memory_space<vmem>>, vector<128x128xf32>,
    %c0_i32_8 = arith.constant 0 : i32
    %9 = arith.cmpi eq, %arg2, %c0_i32_8 : i32
    %10 = arith.extui %9 : i1 to i32
    %c0_i32_9 = arith.constant 0 : i32
    %11 = arith.cmpi ne, %10, %c0_i32_9 : i32
    scf.if %11 {
      %c0_10 = arith.constant 0 : index
      %c0_11 = arith.constant 0 : index
      %12 = vector.load %arg7[%c0_10, %c0_11] : memref<128x128xf32, #tpu.memory_space<vmem>>, vector<128x128xf32>
      %c0_12 = arith.constant 0 : index
      %c0_13 = arith.constant 0 : index
      %13 = vector.load %arg5[%c0_12, %c0_13] : memref<1x128xf32, #tpu.memory_space<vmem>>, vector<1x128xf32>
      %14 = vector.broadcast %13 : vector<1x128xf32> to vector<128x128xf32>
      %15 = arith.addf %12, %14 : vector<128x128xf32>
      %c0_14 = arith.constant 0 : index
      %c0_15 = arith.constant 0 : index
      %16 = vector.load %arg6[%c0_14, %c0_15] : memref<128x128xf32, #tpu.memory_space<vmem>>, vector<128x128xf32>
      tpu.vector_store %arg6[%c0_14, %c0_15], %15 {strides = array<i32>} : memref<128x128xf32, #tpu.memory_space<vmem>>, vector<128x128xf32>,
    } else {
    }
    return
  }
  func.func @transform_0(%arg0: i32, %arg1: i32, %arg2: i32) -> (i32, i32) {
    %c0_i32 = arith.constant 0 : i32
    return %arg0, %arg2 : i32, i32
  }
  func.func @transform_1(%arg0: i32, %arg1: i32, %arg2: i32) -> (i32, i32) {
    %c0_i32 = arith.constant 0 : i32
    return %arg2, %arg1 : i32, i32
  }
  func.func @transform_2(%arg0: i32, %arg1: i32, %arg2: i32) -> (i32, i32) {
    %c0_i32 = arith.constant 0 : i32
    %c0_i32_0 = arith.constant 0 : i32
    return %c0_i32, %arg1 : i32, i32
  }
  func.func @transform_3(%arg0: i32, %arg1: i32, %arg2: i32) -> (i32, i32) {
    %c0_i32 = arith.constant 0 : i32
    return %arg0, %arg1 : i32, i32
  }
}

</mosaic_0001>

<bundles_post_ra>
// kernel: fused_downsample.1
= control target key start
LH: loop header
LB: loop body
LE: loop exit
PB: predicated region body
PF: predicated region fallthrough
CT: control target
= control target key end

     0   :  { %s814_s12 = smov 0   ;;  %s816_s13 = smov 0   ;;  %s1023_s0 = inlined_call_operand.vmem [shape: f32[1024,256], index: 0, kind: input, shape index: {}]   ;;  %s1024_s1 = inlined_call_operand.vmem [shape: f32[256,128], index: 1, kind: input, shape index: {}]   ;;  %s1025_s2 = inlined_call_operand.vmem [shape: f32[1,128], index: 2, kind: input, shape index: {}]   ;;  %s1026_s3 = inlined_call_operand.vmem [shape: f32[1024,128], index: 3, kind: output, shape index: {}]  }
   0x1   :  { %s818_s14 = smov 0  }
   0x2 LB: > { %s32_s15 = sadd.s32 1, %s788_s13  ;;  %p704_p0 = scmp.ge.s32.totalorder %s792_s14, 1  ;;  %s792_s14 = sphi %s818_s14, %s13_s14   ;;  %s788_s13 = sphi %s816_s13, %s1028_s13   ;;  %s784_s12 = sphi %s814_s12, %s1027_s12  }
   0x3   : > { %p34_p1 = scmp.ge.s32.totalorder %s32_s15, 8  ;;  %p191_p2 = scmp.lt.s32.totalorder %s792_s14, 9 }
   0x5   : > { %s1030_s15 = smov (%p34_p1, %s32_s15), 0  ;;  %p192_p3 = pnand %p704_p0, %p191_p2 }
   0x6   : > { %s705_s25 = sshll.u32 (!%p192_p3), %s784_s12, 4 }
   0x7   : > { %195 = sbr.rel (%p192_p3) target bundleno = 238 (0xee), region = 32  ;;  %p236_p4 = scmp.lt.s32.totalorder (!%p192_p3), %s705_s25, 127 }
   0xc   : > { %v350_v0 = vld [vmem:[%s1024_s1 + $0x78] sm:$0xff]  ;;  %v349_v2 = vld [vmem:[%s1024_s1 + $0x70] sm:$0xff]  ;;  %v348_v4 = vld [vmem:[%s1024_s1 + $0x68] sm:$0xff]  ;;  %s1032_s25 = smov (!%p236_p4, %s705_s25), 127 }
   0xd   : > { %v366_v1 = vld [vmem:[%s1024_s1 + $0xf8] sm:$0xff]  ;;  %713 = vmatpush.msra.mxu2 %v350_v0  ;;  %v365_v3 = vld [vmem:[%s1024_s1 + $0xf0] sm:$0xff]  ;;  %v364_v5 = vld [vmem:[%s1024_s1 + $0xe8] sm:$0xff]  ;;  %367 = vmatpush.msra.mxu0 %v350_v0  ;;  %s712_s22 = sshll.u32 %s1032_s25, 4  ;;  %s709_s11 = sshll.u32 %s1032_s25, 3 }
   0xe   : > { %729 = vmatpush.msra.mxu3 %v366_v1  ;;  %432 = vmatpush.msra.mxu1 %v366_v1  ;;  %v347_v6 = vld [vmem:[%s1024_s1 + $0x60] sm:$0xff]  ;;  %v346_v8 = vld [vmem:[%s1024_s1 + $0x58] sm:$0xff]  ;;  %v345_v10 = vld [vmem:[%s1024_s1 + $0x50] sm:$0xff]  ;;  %s931_s6 = scalar_lea.vmem %s1023_s0, %s712_s22  ;;  %s980_s20 = scalar_lea.vmem %s1026_s3, %s709_s11 }
   0xf   : > { %714 = vmatpush.msra.mxu2 %v349_v2  ;;  %v363_v7 = vld [vmem:[%s1024_s1 + $0xe0] sm:$0xff]  ;;  %368 = vmatpush.msra.mxu0 %v349_v2  ;;  %v362_v9 = vld [vmem:[%s1024_s1 + $0xd8] sm:$0xff]  ;;  %v361_v11 = vld [vmem:[%s1024_s1 + $0xd0] sm:$0xff] }
  0x10   : > { %730 = vmatpush.msra.mxu3 %v365_v3  ;;  %433 = vmatpush.msra.mxu1 %v365_v3  ;;  %v344_v12 = vld [vmem:[%s1024_s1 + $0x48] sm:$0xff]  ;;  %v343_v14 = vld [vmem:[%s1024_s1 + $0x40] sm:$0xff]  ;;  %v342_v16 = vld [vmem:[%s1024_s1 + $0x38] sm:$0xff] }
  0x11   : > { %715 = vmatpush.msra.mxu2 %v348_v4  ;;  %369 = vmatpush.msra.mxu0 %v348_v4  ;;  %v360_v13 = vld [vmem:[%s1024_s1 + $0xc8] sm:$0xff]  ;;  %v359_v15 = vld [vmem:[%s1024_s1 + $0xc0] sm:$0xff]  ;;  %v358_v17 = vld [vmem:[%s1024_s1 + $0xb8] sm:$0xff] }
  0x12   : > { %731 = vmatpush.msra.mxu3 %v364_v5  ;;  %434 = vmatpush.msra.mxu1 %v364_v5  ;;  %v341_v18 = vld [vmem:[%s1024_s1 + $0x30] sm:$0xff]  ;;  %v340_v20 = vld [vmem:[%s1024_s1 + $0x28] sm:$0xff]  ;;  %v339_v22 = vld [vmem:[%s1024_s1 + $0x20] sm:$0xff] }
  0x13   : > { %716 = vmatpush.msra.mxu2 %v347_v6  ;;  %370 = vmatpush.msra.mxu0 %v347_v6  ;;  %v357_v19 = vld [vmem:[%s1024_s1 + $0xb0] sm:$0xff]  ;;  %v356_v21 = vld [vmem:[%s1024_s1 + $0xa8] sm:$0xff]  ;;  %v355_v23 = vld [vmem:[%s1024_s1 + $0xa0] sm:$0xff] }
  0x14   : > { %732 = vmatpush.msra.mxu3 %v363_v7  ;;  %435 = vmatpush.msra.mxu1 %v363_v7  ;;  %v338_v24 = vld [vmem:[%s1024_s1 + $0x18] sm:$0xff]  ;;  %v337_v26 = vld [vmem:[%s1024_s1 + $0x10] sm:$0xff]  ;;  %v336_v28 = vld [vmem:[%s1024_s1 + $0x8] sm:$0xff] }
  0x15   : > { %717 = vmatpush.msra.mxu2 %v346_v8  ;;  %371 = vmatpush.msra.mxu0 %v346_v8  ;;  %v354_v25 = vld [vmem:[%s1024_s1 + $0x98] sm:$0xff]  ;;  %v353_v27 = vld [vmem:[%s1024_s1 + $0x90] sm:$0xff]  ;;  %v352_v29 = vld [vmem:[%s1024_s1 + $0x88] sm:$0xff] }
  0x16   : > { %733 = vmatpush.msra.mxu3 %v362_v9  ;;  %436 = vmatpush.msra.mxu1 %v362_v9  ;;  %v335_v30 = vld [vmem:[%s1024_s1] sm:$0xff]  ;;  %v320_v33 = vld [vmem:[%s931_s6 + $0x88] sm:$0xff]  ;;  %v321_v36 = vld [vmem:[%s931_s6 + $0x90] sm:$0xff] }
  0x17   : > { %718 = vmatpush.msra.mxu2 %v345_v10  ;;  %372 = vmatpush.msra.mxu0 %v345_v10  ;;  %v351_v31 = vld [vmem:[%s1024_s1 + $0x80] sm:$0xff]  ;;  %v304_v35 = vld [vmem:[%s931_s6 + $0x8] sm:$0xff]  ;;  %v322_v37 = vld [vmem:[%s931_s6 + $0x98] sm:$0xff] }
  0x18   : > { %734 = vmatpush.msra.mxu3 %v361_v11  ;;  %437 = vmatpush.msra.mxu1 %v361_v11  ;;  %v319_v32 = vld [vmem:[%s931_s6 + $0x80] sm:$0xff]  ;;  %v305_v38 = vld [vmem:[%s931_s6 + $0x10] sm:$0xff]  ;;  %v306_v39 = vld [vmem:[%s931_s6 + $0x18] sm:$0xff] }
  0x19   : > { %719 = vmatpush.msra.mxu2 %v344_v12  ;;  %373 = vmatpush.msra.mxu0 %v344_v12  ;;  %v303_v34 = vld [vmem:[%s931_s6] sm:$0xff]  ;;  %v324_v41 = vld [vmem:[%s931_s6 + $0xa8] sm:$0xff]  ;;  %v325_v44 = vld [vmem:[%s931_s6 + $0xb0] sm:$0xff] }
  0x1a   : > { %735 = vmatpush.msra.mxu3 %v360_v13  ;;  %438 = vmatpush.msra.mxu1 %v360_v13  ;;  %v323_v40 = vld [vmem:[%s931_s6 + $0xa0] sm:$0xff]  ;;  %v308_v43 = vld [vmem:[%s931_s6 + $0x28] sm:$0xff]  ;;  %v326_v45 = vld [vmem:[%s931_s6 + $0xb8] sm:$0xff] }
  0x1b   : > { %720 = vmatpush.msra.mxu2 %v343_v14  ;;  %374 = vmatpush.msra.mxu0 %v343_v14  ;;  %v307_v42 = vld [vmem:[%s931_s6 + $0x20] sm:$0xff]  ;;  %v309_v46 = vld [vmem:[%s931_s6 + $0x30] sm:$0xff]  ;;  %v310_v47 = vld [vmem:[%s931_s6 + $0x38] sm:$0xff] }
  0x1c   : > { %736 = vmatpush.msra.mxu3 %v359_v15  ;;  %439 = vmatpush.msra.mxu1 %v359_v15  ;;  %v327_v48 = vld [vmem:[%s931_s6 + $0xc0] sm:$0xff]  ;;  %v328_v49 = vld [vmem:[%s931_s6 + $0xc8] sm:$0xff]  ;;  %v329_v52 = vld [vmem:[%s931_s6 + $0xd0] sm:$0xff] }
  0x1d   : > { %721 = vmatpush.msra.mxu2 %v342_v16  ;;  %375 = vmatpush.msra.mxu0 %v342_v16  ;;  %v311_v50 = vld [vmem:[%s931_s6 + $0x40] sm:$0xff]  ;;  %v312_v51 = vld [vmem:[%s931_s6 + $0x48] sm:$0xff]  ;;  %v330_v53 = vld [vmem:[%s931_s6 + $0xd8] sm:$0xff] }
  0x1e   : > { %737 = vmatpush.msra.mxu3 %v358_v17  ;;  %440 = vmatpush.msra.mxu1 %v358_v17  ;;  %v313_v54 = vld [vmem:[%s931_s6 + $0x50] sm:$0xff]  ;;  %v314_v55 = vld [vmem:[%s931_s6 + $0x58] sm:$0xff]  ;;  %v331_v56 = vld [vmem:[%s931_s6 + $0xe0] sm:$0xff] }
  0x1f   : > { %722 = vmatpush.msra.mxu2 %v341_v18  ;;  %376 = vmatpush.msra.mxu0 %v341_v18  ;;  %v332_v57 = vld [vmem:[%s931_s6 + $0xe8] sm:$0xff]  ;;  %v315_v58 = vld [vmem:[%s931_s6 + $0x60] sm:$0xff]  ;;  %v333_v60 = vld [vmem:[%s931_s6 + $0xf0] sm:$0xff] }
  0x20   : > { %738 = vmatpush.msra.mxu3 %v357_v19  ;;  %441 = vmatpush.msra.mxu1 %v357_v19  ;;  %v316_v59 = vld [vmem:[%s931_s6 + $0x68] sm:$0xff]  ;;  %v334_v61 = vld [vmem:[%s931_s6 + $0xf8] sm:$0xff]  ;;  %v317_v62 = vld [vmem:[%s931_s6 + $0x70] sm:$0xff] }
  0x21   : > { %723 = vmatpush.msra.mxu2 %v340_v20  ;;  %377 = vmatpush.msra.mxu0 %v340_v20  ;;  %v318_v63 = vld [vmem:[%s931_s6 + $0x78] sm:$0xff]  ;;  %v975_v0 = vld [vmem:[%s1025_s2] ss:$0 sm:$0xff] }
  0x22   : > { %739 = vmatpush.msra.mxu3 %v356_v21  ;;  %442 = vmatpush.msra.mxu1 %v356_v21 }
  0x23   : > { %724 = vmatpush.msra.mxu2 %v339_v22  ;;  %378 = vmatpush.msra.mxu0 %v339_v22 }
  0x24   : > { %740 = vmatpush.msra.mxu3 %v355_v23  ;;  %443 = vmatpush.msra.mxu1 %v355_v23 }
  0x25   : > { %725 = vmatpush.msra.mxu2 %v338_v24  ;;  %379 = vmatpush.msra.mxu0 %v338_v24 }
  0x26   : > { %741 = vmatpush.msra.mxu3 %v354_v25  ;;  %444 = vmatpush.msra.mxu1 %v354_v25 }
  0x27   : > { %726 = vmatpush.msra.mxu2 %v337_v26  ;;  %380 = vmatpush.msra.mxu0 %v337_v26 }
  0x28   : > { %742 = vmatpush.msra.mxu3 %v353_v27  ;;  %445 = vmatpush.msra.mxu1 %v353_v27 }
  0x29   : > { %727 = vmatpush.msra.mxu2 %v336_v28  ;;  %381 = vmatpush.msra.mxu0 %v336_v28 }
  0x2a   : > { %743 = vmatpush.msra.mxu3 %v352_v29  ;;  %446 = vmatpush.msra.mxu1 %v352_v29 }
  0x2b   : > { %728 = vmatpush.msra.mxu2 %v335_v30  ;;  %382 = vmatpush.msra.mxu0 %v335_v30 }
  0x2c   : > { %744 = vmatpush.msra.mxu3 %v351_v31  ;;  %407 = vmatmul.f32.vlgmr.msra.gmra.mxu2 %v319_v32 }
  0x2d   : > { %472 = vmatmul.f32.vlgmr.msra.gmra.mxu3 %v320_v33  ;;  %447 = vmatpush.msra.mxu1 %v351_v31 }
  0x2e   : > { %383 = vmatmul.f32.vlgmr.msra.gmra.mxu0 %v303_v34  ;;  %448 = vmatmul.f32.vlgmr.msra.gmra.mxu1 %v304_v35 }
  0x34   : > { %410 = vmatmul.f32.gmra.mxu2 %v321_v36 }
  0x35   : > { %475 = vmatmul.f32.gmra.mxu3 %v322_v37 }
  0x36   : > { %386 = vmatmul.f32.gmra.mxu0 %v305_v38  ;;  %451 = vmatmul.f32.gmra.mxu1 %v306_v39 }
  0x3c   : > { %413 = vmatmul.f32.gmra.mxu2 %v323_v40 }
  0x3d   : > { %478 = vmatmul.f32.gmra.mxu3 %v324_v41 }
  0x3e   : > { %389 = vmatmul.f32.gmra.mxu0 %v307_v42  ;;  %454 = vmatmul.f32.gmra.mxu1 %v308_v43 }
  0x44   : > { %416 = vmatmul.f32.gmra.mxu2 %v325_v44 }
  0x45   : > { %481 = vmatmul.f32.gmra.mxu3 %v326_v45 }
  0x46   : > { %392 = vmatmul.f32.gmra.mxu0 %v309_v46  ;;  %457 = vmatmul.f32.gmra.mxu1 %v310_v47 }
  0x4c   : > { %419 = vmatmul.f32.gmra.mxu2 %v327_v48 }
  0x4d   : > { %484 = vmatmul.f32.gmra.mxu3 %v328_v49 }
  0x4e   : > { %395 = vmatmul.f32.gmra.mxu0 %v311_v50  ;;  %460 = vmatmul.f32.gmra.mxu1 %v312_v51 }
  0x54   : > { %422 = vmatmul.f32.gmra.mxu2 %v329_v52 }
  0x55   : > { %487 = vmatmul.f32.gmra.mxu3 %v330_v53 }
  0x56   : > { %398 = vmatmul.f32.gmra.mxu0 %v313_v54  ;;  %463 = vmatmul.f32.gmra.mxu1 %v314_v55 }
  0x5c   : > { %425 = vmatmul.f32.gmra.mxu2 %v331_v56 }
  0x5d   : > { %490 = vmatmul.f32.gmra.mxu3 %v332_v57 }
  0x5e   : > { %401 = vmatmul.f32.gmra.mxu0 %v315_v58  ;;  %466 = vmatmul.f32.gmra.mxu1 %v316_v59 }
  0x64   : > { %428 = vmatmul.f32.gmra.mxu2 %v333_v60 }
  0x65   : > { %493 = vmatmul.f32.gmra.mxu3 %v334_v61 }
  0x66   : > { %404 = vmatmul.f32.gmra.mxu0 %v317_v62  ;;  %469 = vmatmul.f32.gmra.mxu1 %v318_v63 }
  0xab   : > { %v384_v1 = vpop.f32.mrf.mxu0  ;;  %v449_v2 = vpop.f32.mrf.mxu1 }
  0xac   : > { %v450_v3 = vadd.f32 %v449_v2, %v384_v1 }
  0xae   : > { %v552_v4 = vadd.f32 %v975_v0, %v450_v3 }
  0xaf   : > { %v408_v5 = vpop.f32.mrf.mxu2 }
  0xb0   : > { %v473_v6 = vpop.f32.mrf.mxu3  ;;  %568 = vst [vmem:[%s980_s20] sm:$0xff] %v552_v4 }
  0xb1   : > { %v474_v7 = vadd.f32 %v473_v6, %v408_v5 }
  0xb3   : > { %v560_v8 = vadd.f32 %v975_v0, %v474_v7  ;;  %v387_v9 = vpop.f32.mrf.mxu0  ;;  %v452_v10 = vpop.f32.mrf.mxu1 }
  0xb4   : > { %v453_v11 = vadd.f32 %v452_v10, %v387_v9 }
  0xb5   : > { %576 = vst [vmem:[%s980_s20 + $0x40] sm:$0xff] %v560_v8 }
  0xb6   : > { %v553_v12 = vadd.f32 %v975_v0, %v453_v11 }
  0xb7   : > { %v411_v13 = vpop.f32.mrf.mxu2 }
  0xb8   : > { %v476_v14 = vpop.f32.mrf.mxu3  ;;  %569 = vst [vmem:[%s980_s20 + $0x8] sm:$0xff] %v553_v12 }
  0xb9   : > { %v477_v15 = vadd.f32 %v476_v14, %v411_v13 }
  0xbb   : > { %v561_v16 = vadd.f32 %v975_v0, %v477_v15  ;;  %v390_v17 = vpop.f32.mrf.mxu0  ;;  %v455_v18 = vpop.f32.mrf.mxu1 }
  0xbc   : > { %v456_v19 = vadd.f32 %v455_v18, %v390_v17 }
  0xbd   : > { %577 = vst [vmem:[%s980_s20 + $0x48] sm:$0xff] %v561_v16 }
  0xbe   : > { %v554_v20 = vadd.f32 %v975_v0, %v456_v19 }
  0xbf   : > { %v414_v21 = vpop.f32.mrf.mxu2 }
  0xc0   : > { %v479_v22 = vpop.f32.mrf.mxu3  ;;  %570 = vst [vmem:[%s980_s20 + $0x10] sm:$0xff] %v554_v20 }
  0xc1   : > { %v480_v23 = vadd.f32 %v479_v22, %v414_v21 }
  0xc3   : > { %v562_v24 = vadd.f32 %v975_v0, %v480_v23  ;;  %v393_v25 = vpop.f32.mrf.mxu0  ;;  %v458_v26 = vpop.f32.mrf.mxu1 }
  0xc4   : > { %v459_v27 = vadd.f32 %v458_v26, %v393_v25 }
  0xc5   : > { %578 = vst [vmem:[%s980_s20 + $0x50] sm:$0xff] %v562_v24 }
  0xc6   : > { %v555_v28 = vadd.f32 %v975_v0, %v459_v27 }
  0xc7   : > { %v417_v29 = vpop.f32.mrf.mxu2 }
  0xc8   : > { %v482_v30 = vpop.f32.mrf.mxu3  ;;  %571 = vst [vmem:[%s980_s20 + $0x18] sm:$0xff] %v555_v28 }
  0xc9   : > { %v483_v31 = vadd.f32 %v482_v30, %v417_v29 }
  0xcb   : > { %v563_v32 = vadd.f32 %v975_v0, %v483_v31  ;;  %v396_v33 = vpop.f32.mrf.mxu0  ;;  %v461_v34 = vpop.f32.mrf.mxu1 }
  0xcc   : > { %v462_v35 = vadd.f32 %v461_v34, %v396_v33 }
  0xcd   : > { %579 = vst [vmem:[%s980_s20 + $0x58] sm:$0xff] %v563_v32 }
  0xce   : > { %v556_v36 = vadd.f32 %v975_v0, %v462_v35 }
  0xcf   : > { %v420_v37 = vpop.f32.mrf.mxu2 }
  0xd0   : > { %v485_v38 = vpop.f32.mrf.mxu3  ;;  %572 = vst [vmem:[%s980_s20 + $0x20] sm:$0xff] %v556_v36 }
  0xd1   : > { %v486_v39 = vadd.f32 %v485_v38, %v420_v37 }
  0xd3   : > { %v564_v40 = vadd.f32 %v975_v0, %v486_v39  ;;  %v399_v41 = vpop.f32.mrf.mxu0  ;;  %v464_v42 = vpop.f32.mrf.mxu1 }
  0xd4   : > { %v465_v43 = vadd.f32 %v464_v42, %v399_v41 }
  0xd5   : > { %580 = vst [vmem:[%s980_s20 + $0x60] sm:$0xff] %v564_v40 }
  0xd6   : > { %v557_v44 = vadd.f32 %v975_v0, %v465_v43 }
  0xd7   : > { %v423_v45 = vpop.f32.mrf.mxu2 }
  0xd8   : > { %v488_v46 = vpop.f32.mrf.mxu3  ;;  %573 = vst [vmem:[%s980_s20 + $0x28] sm:$0xff] %v557_v44 }
  0xd9   : > { %v489_v47 = vadd.f32 %v488_v46, %v423_v45 }
  0xdb   : > { %v565_v48 = vadd.f32 %v975_v0, %v489_v47  ;;  %v402_v49 = vpop.f32.mrf.mxu0  ;;  %v467_v50 = vpop.f32.mrf.mxu1 }
  0xdc   : > { %v468_v51 = vadd.f32 %v467_v50, %v402_v49 }
  0xdd   : > { %581 = vst [vmem:[%s980_s20 + $0x68] sm:$0xff] %v565_v48 }
  0xde   : > { %v558_v52 = vadd.f32 %v975_v0, %v468_v51 }
  0xdf   : > { %v426_v53 = vpop.f32.mrf.mxu2 }
  0xe0   : > { %v491_v54 = vpop.f32.mrf.mxu3  ;;  %574 = vst [vmem:[%s980_s20 + $0x30] sm:$0xff] %v558_v52 }
  0xe1   : > { %v492_v55 = vadd.f32 %v491_v54, %v426_v53 }
  0xe3   : > { %v566_v56 = vadd.f32 %v975_v0, %v492_v55  ;;  %v405_v57 = vpop.f32.mrf.mxu0  ;;  %v470_v58 = vpop.f32.mrf.mxu1 }
  0xe4   : > { %v471_v59 = vadd.f32 %v470_v58, %v405_v57 }
  0xe5   : > { %582 = vst [vmem:[%s980_s20 + $0x70] sm:$0xff] %v566_v56 }
  0xe6   : > { %v559_v60 = vadd.f32 %v975_v0, %v471_v59 }
  0xe7   : > { %v429_v61 = vpop.f32.mrf.mxu2 }
  0xe8   : > { %v494_v62 = vpop.f32.mrf.mxu3  ;;  %575 = vst [vmem:[%s980_s20 + $0x38] sm:$0xff] %v559_v60 }
  0xe9   : > { %v495_v63 = vadd.f32 %v494_v62, %v429_v61 }
  0xeb   : > { %v567_v1 = vadd.f32 %v975_v0, %v495_v63 }
  0xed   : > { %583 = vst [vmem:[%s980_s20 + $0x78] sm:$0xff] %v567_v1 }
  0xee PF: > { %s13_s14 = sadd.s32 1, %s792_s14   ;;  %s1027_s12 = smov %s788_s13 }
  0xef   : > { %p10_p5 = scmp.ge.s32.totalorder %s13_s14, 10   ;;  %s1028_s13 = smov %s1030_s15 }
  0xf1   :  { %12 = sbr.rel (!%p10_p5) target bundleno = 2 (0x2), region = 76 }

</bundles_post_ra>
